<compile_context>
chip_gen: v5e
topology: v5e:2x2
jax: 0.10.0
libtpu: 0.0.40
codegen_flags: <defaults>
</compile_context>

<pallas_src>
import functools

import jax
import jax.numpy as jnp
import numpy as np
from jax.experimental import pallas as pl
from jax.experimental.pallas import tpu as pltpu

MIN_LOG_STD = -20.0
MAX_LOG_STD = 2.0
HALF_LOG_2PI = 0.5 * float(np.log(2.0 * np.pi))
# log_prob contributed by each zero-padded head lane (mu=0, log_std=0, std=1, eps=0):
#   -0.5*0 - 0 - 0.5*log(2*pi) - log(1 - 0 + 1e-7)   (the log evaluated in fp32)
_PAD_LANE_LOGP = -(HALF_LOG_2PI + float(np.log(np.float32(1.0) + np.float32(1e-7))))


def _round_up(x, m):
    return ((x + m - 1) // m) * m


def actor_kernel(state_ref, w1_ref, b1_ref, w2_ref, b2_ref, whead_ref, bhead_ref,
                 eps_ref, out_ref, eps_scr, *, a_pad, n_actions):
    x = state_ref[...]                                            # [TB, n_states] f32

    # feature trunk: bf16 inputs on the MXU, fp32 accumulation, fp32 elementwise.
    h1 = jnp.dot(x.astype(jnp.bfloat16), w1_ref[...],
                 preferred_element_type=jnp.float32) + b1_ref[...]
    h1 = jnp.maximum(h1, 0.0)
    h2 = jnp.dot(h1.astype(jnp.bfloat16), w2_ref[...],
                 preferred_element_type=jnp.float32) + b2_ref[...]
    h2 = jnp.maximum(h2, 0.0)

    # fused mu / log_std head: one matmul, sliced at the 128-lane boundary.
    head = jnp.dot(h2.astype(jnp.bfloat16), whead_ref[...],
                   preferred_element_type=jnp.float32) + bhead_ref[...]
    mu = head[:, :a_pad]
    log_std = jnp.clip(head[:, a_pad:], MIN_LOG_STD, MAX_LOG_STD)
    std = jnp.exp(log_std)

    # Stage the narrow eps input (n_actions lanes) into a zero-filled 128-lane scratch;
    # padded lanes stay exactly zero (required by the constant correction below).
    eps_scr[...] = jnp.zeros_like(eps_scr)
    eps_scr[:, :n_actions] = eps_ref[...]
    eps = eps_scr[...]                                            # [TB, a_pad] f32

    # rsample: z = mu + std * eps ; action = tanh(z)
    z = mu + std * eps
    action = jnp.tanh(z)

    # Normal(mu,std).log_prob(z) = -(z-mu)^2/(2 std^2) - log_std - 0.5 log(2 pi)
    # and (z - mu) == std * eps exactly, so the quadratic term is -eps^2/2.
    log_prob = (-0.5 * eps * eps - log_std - HALF_LOG_2PI
                - jnp.log(1.0 - action * action + 1e-7))

    # Padded head lanes (zero whead/bhead columns, zero eps) each contribute exactly
    # _PAD_LANE_LOGP; correct the row sum with a constant instead of an iota/where mask.
    logp_sum = (jnp.sum(log_prob, axis=-1, keepdims=True)
                - float(a_pad - n_actions) * _PAD_LANE_LOGP)      # [TB, 1]

    # Single lane-dense [TB, a_pad] store: action in lanes [:n_actions], log_prob at
    # lane n_actions.  (action is exactly 0 on all padded lanes, so a select suffices.)
    lane = jax.lax.broadcasted_iota(jnp.int32, (action.shape[0], a_pad), 1)
    out_ref[...] = jnp.where(lane == n_actions,
                             jnp.broadcast_to(logp_sum, action.shape), action)


def pack_params(params):
    """Pack raw fp32 Linear params into the bf16 / fused-head layout the kernel uses.

    Invariant relied on by the kernel's constant padded-lane correction: all head
    columns beyond n_actions (within each a_pad half) are exactly zero.
    """
    n_actions = params["wmu"].shape[1]
    h2 = params["w2"].shape[1]
    # Reserve at least one spare lane after the actions to carry log_prob in the output.
    a_pad = _round_up(n_actions + 1, 128)

    whead = jnp.zeros((h2, 2 * a_pad), jnp.float32)
    whead = whead.at[:, :n_actions].set(params["wmu"])
    whead = whead.at[:, a_pad:a_pad + n_actions].set(params["wls"])
    bhead = jnp.zeros((1, 2 * a_pad), jnp.float32)
    bhead = bhead.at[:, :n_actions].set(params["bmu"].reshape(1, -1))
    bhead = bhead.at[:, a_pad:a_pad + n_actions].set(params["bls"].reshape(1, -1))

    return dict(
        w1=params["w1"].astype(jnp.bfloat16), b1=params["b1"].astype(jnp.float32),
        w2=params["w2"].astype(jnp.bfloat16), b2=params["b2"].astype(jnp.float32),
        whead=whead.astype(jnp.bfloat16), bhead=bhead,
        n_actions=n_actions, a_pad=a_pad)


def _choose_tile(batch, block_b):
    """Batch tile selection: multiple of 8, minimal padded rows, and >= 2 grid steps
    when batch >= 16 so the 'parallel' axis shards across both v7x TensorCores.
    Total VMEM footprint is a few MiB at most, so tiles never need to shrink per-chip."""
    block_b = max(8, _round_up(block_b, 8))          # keep (8,128) divisibility safe
    n_tiles = pl.cdiv(batch, block_b)
    if batch >= 16:
        n_tiles = max(n_tiles, 2)
    tb = min(block_b, _round_up(pl.cdiv(batch, n_tiles), 8))
    b_pad = _round_up(batch, tb)
    return tb, b_pad


def actor_forward(state, packed, eps, *, block_b=256):
    """state: [B, n_states] f32; eps: [B, n_actions] f32 standard normal."""
    B, n_states = state.shape
    n_actions = packed["n_actions"]
    a_pad = packed["a_pad"]
    assert eps.shape == (B, n_actions)

    tb, b_pad = _choose_tile(B, block_b)

    if b_pad != B:   # pad batch rows only (no lane padding of eps)
        state_p = jnp.zeros((b_pad, n_states), jnp.float32).at[:B].set(state)
        eps_p = jnp.zeros((b_pad, n_actions), jnp.float32).at[:B].set(eps)
    else:
        state_p, eps_p = state, eps

    grid = (b_pad // tb,)
    kernel = functools.partial(actor_kernel, a_pad=a_pad, n_actions=n_actions)

    out = pl.pallas_call(
        kernel,
        out_shape=jax.ShapeDtypeStruct((b_pad, a_pad), jnp.float32),
        grid=grid,
        in_specs=[
            pl.BlockSpec((tb, n_states), lambda i: (i, 0)),
            pl.BlockSpec(packed["w1"].shape, lambda i: (0, 0)),     # VMEM-resident weights
            pl.BlockSpec(packed["b1"].shape, lambda i: (0, 0)),
            pl.BlockSpec(packed["w2"].shape, lambda i: (0, 0)),
            pl.BlockSpec(packed["b2"].shape, lambda i: (0, 0)),
            pl.BlockSpec(packed["whead"].shape, lambda i: (0, 0)),
            pl.BlockSpec(packed["bhead"].shape, lambda i: (0, 0)),
            pl.BlockSpec((tb, n_actions), lambda i: (i, 0)),        # eps at true width
        ],
        out_specs=pl.BlockSpec((tb, a_pad), lambda i: (i, 0)),
        scratch_shapes=[pltpu.VMEM((tb, a_pad), jnp.float32)],      # eps staging buffer
        compiler_params=pltpu.CompilerParams(dimension_semantics=("parallel",)),
    )(state_p, packed["w1"], packed["b1"], packed["w2"], packed["b2"],
      packed["whead"], packed["bhead"], eps_p)

    action = out[:B, :n_actions]
    log_prob = out[:B, n_actions:n_actions + 1]
    return action, log_prob


def init_params(key, n_states, n_actions, h1=256, h2=512):
    """Deterministic init mimicking PyTorch nn.Linear default (U[-1/sqrt(fan_in), +])."""
    keys = jax.random.split(key, 8)

    def linear(kw, kb, fan_in, fan_out):
        bound = 1.0 / np.sqrt(fan_in)
        w = jax.random.uniform(kw, (fan_in, fan_out), jnp.float32, -bound, bound)
        b = jax.random.uniform(kb, (1, fan_out), jnp.float32, -bound, bound)
        return w, b

    w1, b1 = linear(keys[0], keys[1], n_states, h1)
    w2, b2 = linear(keys[2], keys[3], h1, h2)
    wmu, bmu = linear(keys[4], keys[5], h2, n_actions)
    wls, bls = linear(keys[6], keys[7], h2, n_actions)
    return dict(w1=w1, b1=b1, w2=w2, b2=b2, wmu=wmu, bmu=bmu, wls=wls, bls=bls)


def reference_forward(state, params, eps):
    """Pure-JAX reference of the PyTorch forward, mirroring the kernel's bf16-on-MXU
    numerics but keeping the original (z-mu)^2/(2 std^2) log_prob algebra."""
    def mm(x, w):
        return jnp.dot(x.astype(jnp.bfloat16), w.astype(jnp.bfloat16),
                       preferred_element_type=jnp.float32)

    h1 = jnp.maximum(mm(state, params["w1"]) + params["b1"], 0.0)
    h2 = jnp.maximum(mm(h1, params["w2"]) + params["b2"], 0.0)
    mu = mm(h2, params["wmu"]) + params["bmu"]
    log_std = jnp.clip(mm(h2, params["wls"]) + params["bls"], MIN_LOG_STD, MAX_LOG_STD)
    std = jnp.exp(log_std)
    z = mu + std * eps
    action = jnp.tanh(z)
    log_prob = (-((z - mu) ** 2) / (2.0 * std * std) - log_std - HALF_LOG_2PI)
    log_prob = log_prob - jnp.log(1.0 - action * action + 1e-7)
    return action, jnp.sum(log_prob, axis=-1, keepdims=True)


if __name__ == "__main__":
    # Small shapes consistent with the module: n_states -> 256 -> 512 -> n_actions
    N_STATES, N_ACTIONS = 32, 4

    key = jax.random.PRNGKey(0)
    k_params, k_data = jax.random.split(key, 2)

    params = init_params(k_params, N_STATES, N_ACTIONS)
    packed = pack_params(params)

    def run_check(batch, data_key, block_b=256):
        ks, ke = jax.random.split(data_key, 2)
        state = jax.random.normal(ks, (batch, N_STATES), jnp.float32)
        # eps for rsample() generated outside the kernel (dist.rsample() equivalent)
        eps = jax.random.normal(ke, (batch, N_ACTIONS), jnp.float32)

        action, log_prob = actor_forward(state, packed, eps, block_b=block_b)
        action = jax.block_until_ready(action)
        log_prob = jax.block_until_ready(log_prob)

        ref_action, ref_logp = reference_forward(state, params, eps)
        np.testing.assert_allclose(np.asarray(action), np.asarray(ref_action),
                                   rtol=1e-3, atol=1e-3)
        np.testing.assert_allclose(np.asarray(log_prob), np.asarray(ref_logp),
                                   rtol=5e-3, atol=5e-3)
        assert action.shape == (batch, N_ACTIONS) and log_prob.shape == (batch, 1)

    # single tile (B < 16 -> grid=(1,))
    run_check(8, k_data)
    # two balanced tiles (B=20 -> tb=16, padded to 32, grid=(2,)) - v7x dual-TC path
    run_check(20, jax.random.PRNGKey(1))
    # three tiles with explicit small block_b (B=40 -> tb=16, padded to 48, grid=(3,))
    run_check(40, jax.random.PRNGKey(2), block_b=16)

    print("KERNEL_OK")
</pallas_src>

<mosaic_0001>
module attributes {stable_mosaic.version = 11 : i64} {
  func.func @actor_kernel(%arg0: i32, %arg1: memref<8x32xf32, #tpu.memory_space<vmem>>, %arg2: memref<32x256xbf16, #tpu.memory_space<vmem>>, %arg3: memref<1x256xf32, #tpu.memory_space<vmem>>, %arg4: memref<256x512xbf16, #tpu.memory_space<vmem>>, %arg5: memref<1x512xf32, #tpu.memory_space<vmem>>, %arg6: memref<512x256xbf16, #tpu.memory_space<vmem>>, %arg7: memref<1x256xf32, #tpu.memory_space<vmem>>, %arg8: memref<8x4xf32, #tpu.memory_space<vmem>>, %arg9: memref<8x128xf32, #tpu.memory_space<vmem>>, %arg10: memref<8x128xf32, #tpu.memory_space<vmem>>) attributes {dimension_semantics = [#tpu.dimension_semantics<parallel>], iteration_bounds = array<i64: 1>, scalar_prefetch = 0 : i64, scratch_operands = 1 : i64, tpu.core_type = #tpu.core_type<tc>, window_params = [{transform_indices = @transform_0, window_bounds = array<i64: 8, 32>}, {pipeline_mode = #tpu.pipeline_mode<synchronous>, transform_indices = @transform_1, window_bounds = array<i64: 32, 256>}, {pipeline_mode = #tpu.pipeline_mode<synchronous>, transform_indices = @transform_2, window_bounds = array<i64: 1, 256>}, {pipeline_mode = #tpu.pipeline_mode<synchronous>, transform_indices = @transform_3, window_bounds = array<i64: 256, 512>}, {pipeline_mode = #tpu.pipeline_mode<synchronous>, transform_indices = @transform_4, window_bounds = array<i64: 1, 512>}, {pipeline_mode = #tpu.pipeline_mode<synchronous>, transform_indices = @transform_5, window_bounds = array<i64: 512, 256>}, {pipeline_mode = #tpu.pipeline_mode<synchronous>, transform_indices = @transform_6, window_bounds = array<i64: 1, 256>}, {transform_indices = @transform_7, window_bounds = array<i64: 8, 4>}, {transform_indices = @transform_8, window_bounds = array<i64: 8, 128>}]} {
    %c0 = arith.constant 0 : index
    %c0_0 = arith.constant 0 : index
    %0 = vector.load %arg1[%c0, %c0_0] : memref<8x32xf32, #tpu.memory_space<vmem>>, vector<8x32xf32>
    %1 = arith.truncf %0 : vector<8x32xf32> to vector<8x32xbf16>
    %c0_1 = arith.constant 0 : index
    %c0_2 = arith.constant 0 : index
    %2 = vector.load %arg2[%c0_1, %c0_2] : memref<32x256xbf16, #tpu.memory_space<vmem>>, vector<32x256xbf16>
    %cst = arith.constant dense<0.000000e+00> : vector<8x256xf32>
    %3 = tpu.matmul %1, %2, %cst {dimension_numbers = #tpu.dot_dimension_numbers<[1], [0], [0], [1], [0, 0, 1, 1], [], []>} : vector<8x32xbf16>, vector<32x256xbf16>, vector<8x256xf32> -> vector<8x256xf32>
    %c0_3 = arith.constant 0 : index
    %c0_4 = arith.constant 0 : index
    %4 = vector.load %arg3[%c0_3, %c0_4] : memref<1x256xf32, #tpu.memory_space<vmem>>, vector<1x256xf32>
    %5 = vector.broadcast %4 : vector<1x256xf32> to vector<8x256xf32>
    %6 = arith.addf %3, %5 : vector<8x256xf32>
    %cst_5 = arith.constant 0.000000e+00 : f32
    %7 = vector.broadcast %cst_5 : f32 to vector<8x256xf32>
    %8 = arith.maximumf %6, %7 : vector<8x256xf32>
    %9 = arith.truncf %8 : vector<8x256xf32> to vector<8x256xbf16>
    %c0_6 = arith.constant 0 : index
    %c0_7 = arith.constant 0 : index
    %10 = vector.load %arg4[%c0_6, %c0_7] : memref<256x512xbf16, #tpu.memory_space<vmem>>, vector<256x512xbf16>
    %cst_8 = arith.constant dense<0.000000e+00> : vector<8x512xf32>
    %11 = tpu.matmul %9, %10, %cst_8 {dimension_numbers = #tpu.dot_dimension_numbers<[1], [0], [0], [1], [0, 0, 1, 1], [], []>} : vector<8x256xbf16>, vector<256x512xbf16>, vector<8x512xf32> -> vector<8x512xf32>
    %c0_9 = arith.constant 0 : index
    %c0_10 = arith.constant 0 : index
    %12 = vector.load %arg5[%c0_9, %c0_10] : memref<1x512xf32, #tpu.memory_space<vmem>>, vector<1x512xf32>
    %13 = vector.broadcast %12 : vector<1x512xf32> to vector<8x512xf32>
    %14 = arith.addf %11, %13 : vector<8x512xf32>
    %cst_11 = arith.constant 0.000000e+00 : f32
    %15 = vector.broadcast %cst_11 : f32 to vector<8x512xf32>
    %16 = arith.maximumf %14, %15 : vector<8x512xf32>
    %17 = arith.truncf %16 : vector<8x512xf32> to vector<8x512xbf16>
    %c0_12 = arith.constant 0 : index
    %c0_13 = arith.constant 0 : index
    %18 = vector.load %arg6[%c0_12, %c0_13] : memref<512x256xbf16, #tpu.memory_space<vmem>>, vector<512x256xbf16>
    %cst_14 = arith.constant dense<0.000000e+00> : vector<8x256xf32>
    %19 = tpu.matmul %17, %18, %cst_14 {dimension_numbers = #tpu.dot_dimension_numbers<[1], [0], [0], [1], [0, 0, 1, 1], [], []>} : vector<8x512xbf16>, vector<512x256xbf16>, vector<8x256xf32> -> vector<8x256xf32>
    %c0_15 = arith.constant 0 : index
    %c0_16 = arith.constant 0 : index
    %20 = vector.load %arg7[%c0_15, %c0_16] : memref<1x256xf32, #tpu.memory_space<vmem>>, vector<1x256xf32>
    %21 = vector.broadcast %20 : vector<1x256xf32> to vector<8x256xf32>
    %22 = arith.addf %19, %21 : vector<8x256xf32>
    %23 = vector.extract_strided_slice %22 {offsets = [0, 0], sizes = [8, 128], strides = [1, 1]} : vector<8x256xf32> to vector<8x128xf32>
    %24 = vector.extract_strided_slice %22 {offsets = [0, 128], sizes = [8, 128], strides = [1, 1]} : vector<8x256xf32> to vector<8x128xf32>
    %cst_17 = arith.constant -2.000000e+01 : f32
    %cst_18 = arith.constant 2.000000e+00 : f32
    %25 = vector.broadcast %cst_17 : f32 to vector<8x128xf32>
    %26 = arith.maximumf %25, %24 : vector<8x128xf32>
    %27 = vector.broadcast %cst_18 : f32 to vector<8x128xf32>
    %28 = arith.minimumf %27, %26 : vector<8x128xf32>
    %29 = math.exp %28 : vector<8x128xf32>
    %cst_19 = arith.constant 0.000000e+00 : f32
    %30 = vector.broadcast %cst_19 : f32 to vector<8x128xf32>
    %c0_20 = arith.constant 0 : index
    %c0_21 = arith.constant 0 : index
    %31 = vector.load %arg10[%c0_20, %c0_21] : memref<8x128xf32, #tpu.memory_space<vmem>>, vector<8x128xf32>
    tpu.vector_store %arg10[%c0_20, %c0_21], %30 {strides = array<i32>} : memref<8x128xf32, #tpu.memory_space<vmem>>, vector<8x128xf32>,
    %c0_22 = arith.constant 0 : index
    %c0_23 = arith.constant 0 : index
    %32 = vector.load %arg8[%c0_22, %c0_23] : memref<8x4xf32, #tpu.memory_space<vmem>>, vector<8x4xf32>
    %c0_24 = arith.constant 0 : index
    %c0_25 = arith.constant 0 : index
    %33 = vector.load %arg10[%c0_24, %c0_25] : memref<8x128xf32, #tpu.memory_space<vmem>>, vector<8x4xf32>
    tpu.vector_store %arg10[%c0_24, %c0_25], %32 {strides = array<i32>} : memref<8x128xf32, #tpu.memory_space<vmem>>, vector<8x4xf32>,
    %c0_26 = arith.constant 0 : index
    %c0_27 = arith.constant 0 : index
    %34 = vector.load %arg10[%c0_26, %c0_27] : memref<8x128xf32, #tpu.memory_space<vmem>>, vector<8x128xf32>
    %35 = arith.mulf %29, %34 : vector<8x128xf32>
    %36 = arith.addf %23, %35 : vector<8x128xf32>
    %37 = math.tanh %36 : vector<8x128xf32>
    %cst_28 = arith.constant -5.000000e-01 : f32
    %38 = vector.broadcast %cst_28 : f32 to vector<8x128xf32>
    %39 = arith.mulf %38, %34 : vector<8x128xf32>
    %40 = arith.mulf %39, %34 : vector<8x128xf32>
    %41 = arith.subf %40, %28 : vector<8x128xf32>
    %cst_29 = arith.constant 0.918938517 : f32
    %42 = vector.broadcast %cst_29 : f32 to vector<8x128xf32>
    %43 = arith.subf %41, %42 : vector<8x128xf32>
    %44 = arith.mulf %37, %37 : vector<8x128xf32>
    %cst_30 = arith.constant 1.000000e+00 : f32
    %45 = vector.broadcast %cst_30 : f32 to vector<8x128xf32>
    %46 = arith.subf %45, %44 : vector<8x128xf32>
    %cst_31 = arith.constant 1.000000e-07 : f32
    %47 = vector.broadcast %cst_31 : f32 to vector<8x128xf32>
    %48 = arith.addf %46, %47 : vector<8x128xf32>
    %49 = math.log %48 : vector<8x128xf32>
    %50 = arith.subf %43, %49 : vector<8x128xf32>
    %cst_32 = arith.constant dense<0.000000e+00> : vector<8xf32>
    %51 = vector.multi_reduction <add>, %50, %cst_32 [1] : vector<8x128xf32> to vector<8xf32>
    %52 = vector.shape_cast %51 : vector<8xf32> to vector<8x1xf32>
    %cst_33 = arith.constant -113.948395 : f32
    %53 = vector.broadcast %cst_33 : f32 to vector<8x1xf32>
    %54 = arith.subf %52, %53 : vector<8x1xf32>
    %55 = tpu.iota {dimensions = array<i32: 1>} : vector<8x128xi32>
    %c4_i32 = arith.constant 4 : i32
    %56 = vector.broadcast %c4_i32 : i32 to vector<8x128xi32>
    %57 = arith.cmpi eq, %55, %56 : vector<8x128xi32>
    %58 = vector.shape_cast %54 : vector<8x1xf32> to vector<8x1xf32>
    %59 = vector.broadcast %58 : vector<8x1xf32> to vector<8x128xf32>
    %60 = arith.select %57, %59, %37 : vector<8x128xi1>, vector<8x128xf32>
    %c0_34 = arith.constant 0 : index
    %c0_35 = arith.constant 0 : index
    %61 = vector.load %arg9[%c0_34, %c0_35] : memref<8x128xf32, #tpu.memory_space<vmem>>, vector<8x128xf32>
    tpu.vector_store %arg9[%c0_34, %c0_35], %60 {strides = array<i32>} : memref<8x128xf32, #tpu.memory_space<vmem>>, vector<8x128xf32>,
    return
  }
  func.func @transform_0(%arg0: i32) -> (i32, i32) {
    %c0_i32 = arith.constant 0 : i32
    %c0_i32_0 = arith.constant 0 : i32
    return %arg0, %c0_i32 : i32, i32
  }
  func.func @transform_1(%arg0: i32) -> (i32, i32) {
    %c0_i32 = arith.constant 0 : i32
    %c0_i32_0 = arith.constant 0 : i32
    %c0_i32_1 = arith.constant 0 : i32
    return %c0_i32, %c0_i32_0 : i32, i32
  }
  func.func @transform_2(%arg0: i32) -> (i32, i32) {
    %c0_i32 = arith.constant 0 : i32
    %c0_i32_0 = arith.constant 0 : i32
    %c0_i32_1 = arith.constant 0 : i32
    return %c0_i32, %c0_i32_0 : i32, i32
  }
  func.func @transform_3(%arg0: i32) -> (i32, i32) {
    %c0_i32 = arith.constant 0 : i32
    %c0_i32_0 = arith.constant 0 : i32
    %c0_i32_1 = arith.constant 0 : i32
    return %c0_i32, %c0_i32_0 : i32, i32
  }
  func.func @transform_4(%arg0: i32) -> (i32, i32) {
    %c0_i32 = arith.constant 0 : i32
    %c0_i32_0 = arith.constant 0 : i32
    %c0_i32_1 = arith.constant 0 : i32
    return %c0_i32, %c0_i32_0 : i32, i32
  }
  func.func @transform_5(%arg0: i32) -> (i32, i32) {
    %c0_i32 = arith.constant 0 : i32
    %c0_i32_0 = arith.constant 0 : i32
    %c0_i32_1 = arith.constant 0 : i32
    return %c0_i32, %c0_i32_0 : i32, i32
  }
  func.func @transform_6(%arg0: i32) -> (i32, i32) {
    %c0_i32 = arith.constant 0 : i32
    %c0_i32_0 = arith.constant 0 : i32
    %c0_i32_1 = arith.constant 0 : i32
    return %c0_i32, %c0_i32_0 : i32, i32
  }
  func.func @transform_7(%arg0: i32) -> (i32, i32) {
    %c0_i32 = arith.constant 0 : i32
    %c0_i32_0 = arith.constant 0 : i32
    return %arg0, %c0_i32 : i32, i32
  }
  func.func @transform_8(%arg0: i32) -> (i32, i32) {
    %c0_i32 = arith.constant 0 : i32
    %c0_i32_0 = arith.constant 0 : i32
    return %arg0, %c0_i32 : i32, i32
  }
}

</mosaic_0001>

<bundles_post_ra>
// kernel: tpu_custom_call.1
= control target key start
LH: loop header
LB: loop body
LE: loop exit
PB: predicated region body
PF: predicated region fallthrough
CT: control target
= control target key end

     0   :  { %13 = vsyncpa [#allocation4], 0  ;;  %s2117_s0 = inlined_call_operand.vmem [shape: f32[8,32], index: 0, kind: input, shape index: {}]   ;;  %s2118_s1 = inlined_call_operand.hbm [shape: bf16[32,256], index: 1, kind: input, shape index: {}]   ;;  %s2119_s2 = inlined_call_operand.hbm [shape: f32[1,256], index: 2, kind: input, shape index: {}]   ;;  %s2120_s3 = inlined_call_operand.hbm [shape: bf16[256,512], index: 3, kind: input, shape index: {}]   ;;  %s2121_s4 = inlined_call_operand.vmem [shape: f32[1,512], index: 4, kind: input, shape index: {}]   ;;  %s2122_s5 = inlined_call_operand.hbm [shape: bf16[512,256], index: 5, kind: input, shape index: {}]   ;;  %s2123_s6 = inlined_call_operand.vmem [shape: f32[1,256], index: 6, kind: input, shape index: {}]   ;;  %s2124_s7 = inlined_call_operand.vmem [shape: f32[8,4], index: 7, kind: input, shape index: {}]   ;;  %s2125_s8 = inlined_call_operand.hbm [shape: f32[8,128], index: 8, kind: output, shape index: {}]  }
   0x1   :  { %14 = vsyncpa [#allocation7], 0 }
   0x2   :  { %15 = vsyncpa [#allocation10], 0  ;;  %s37_s29 = sshll.u32 %s2119_s2, 4  ;;  %s38_s29 = int_to_ptr.hbm [resolvable:$true] %s37_s29 }
   0x3   :  { %16 = vsyncpa [#allocation5], 0  ;;  %s2015_s30 = smov [#allocation6]   ;;  %s23_s12 = sshll.u32 %s2118_s1, 4  ;;  %s24_s12 = int_to_ptr.hbm [resolvable:$true] %s23_s12 }
   0x4   :  { %s39_s9 = sshll.u32 %s2015_s30, 4  ;;  %s2016_s13 = smov [#allocation3]   ;;  %s40_s9 = int_to_ptr.vmem [resolvable:$true] %s39_s9 }
   0x5   :  { %42 = dma.hbm_to_vmem [thread:$0]  %s38_s29, 32, %s40_s9, [#allocation7]  }
   0x6   :  { %s25_s14 = sshll.u32 %s2016_s13, 4  ;;  %s2017_s15 = smov 128   ;;  %s26_s14 = int_to_ptr.vmem [resolvable:$true] %s25_s14 }
   0x7   :  { %s2018_s16 = smov 8   ;;  %s47_s2 = sshll.u32 %s2120_s3, 4  ;;  %s48_s2 = int_to_ptr.hbm [resolvable:$true] %s47_s2 }
   0x8   :  { %31 = dma.hbm_to_vmem [thread:$0]  %s24_s12, 512, %s26_s14, [#allocation4], %s2017_s15, %s2017_s15, %s2018_s16  }
   0x9   :  { %s2019_s19 = smov [#allocation8]   ;;  %s62_s1 = sshll.u32 %s2122_s5, 4  ;;  %s63_s1 = int_to_ptr.hbm [resolvable:$true] %s62_s1 }
   0xa   :  { %s49_s20 = sshll.u32 %s2019_s19, 4  ;;  %s2020_s23 = smov 256   ;;  %s50_s20 = int_to_ptr.vmem [resolvable:$true] %s49_s20 }
   0xb   :  { %s2021_s24 = smov 16   ;;  %s2022_s25 = smov [#allocation9]  }
   0xc   :  { %55 = dma.hbm_to_vmem [thread:$0]  %s48_s2, 8192, %s50_s20, [#allocation7], %s2020_s23, %s2020_s23, %s2021_s24  }
   0xd   :  { %s64_s26 = sshll.u32 %s2022_s25, 4  ;;  %s65_s26 = int_to_ptr.vmem [resolvable:$true] %s64_s26 }
   0xe   :  { %70 = dma.hbm_to_vmem [thread:$0]  %s63_s1, 8192, %s65_s26, [#allocation10], %s2017_s15, %s2017_s15, %s2018_s16  }
   0xf   :  { %2007 = dma.done.wait [#allocation4], 512  }
  0x10   :  { %2008 = vsyncadd [#allocation4], 4294966784 }
  0x11   :  { %2009 = dma.done.wait [#allocation7], 8224  }
  0x12   :  { %2010 = vsyncadd [#allocation7], 4294959072 }
  0x13   :  { %2011 = dma.done.wait [#allocation10], 8192  }
  0x14   :  { %2012 = vsyncadd [#allocation10], 4294959104  ;;  %v1217_v0 = vld [vmem:[#allocation3 + $0x10] sm:$0xf]  ;;  %v1742_v1 = vld [vmem:[#allocation3 + $0x14] sm:$0xf0] }
  0x15   :  { %v1741_v2 = vld [vmem:[#allocation3 + $0x14] sm:$0xf]  ;;  %v1218_v3 = vor.u32 %v1742_v1, %v1217_v0  ;;  %v1219_v4 = vld [vmem:[#allocation3 + $0x18] sm:$0xf0]  ;;  %v1209_v5 = vld [vmem:[#allocation3] sm:$0xf] }
  0x16   :  { %v1740_v6 = vld [vmem:[#allocation3 + $0x4] sm:$0xf0]  ;;  %v1222_v7 = vor.u32 %v1741_v2, %v1219_v4  ;;  %v1739_v8 = vld [vmem:[#allocation3 + $0x4] sm:$0xf]  ;;  %v1211_v9 = vld [vmem:[#allocation3 + $0x8] sm:$0xf0] }
  0x17   :  { %v92_v10 = vld [vmem:[%s2117_s0] sm:$0xff]  ;;  %vm124_vm0 = vcmask 261120   ;;  %134 = vmatpush.bf16.msra.mxu0 %v1218_v3  ;;  %v1210_v11 = vor.u32 %v1740_v6, %v1209_v5  ;;  %v1339_v12 = vld [vmem:[#allocation8 + $0xe0] sm:$0xf]  ;;  %v1773_v13 = vld [vmem:[#allocation8 + $0xec] sm:$0xf0]  ;;  %v1214_v15 = vor.u32 %v1739_v8, %v1211_v9 }
  0x18   :  { %v1467_v14 = vld [vmem:[#allocation8 + $0x1e0] sm:$0xf]  ;;  %147 = vmatpush.bf16.msra.mxu1 %v1222_v7  ;;  %v1340_v16 = vor.u32 %v1773_v13, %v1339_v12  ;;  %v1805_v17 = vld [vmem:[#allocation8 + $0x1ec] sm:$0xf0]  ;;  %v1771_v18 = vld [vmem:[#allocation8 + $0xe4] sm:$0xf]  ;;  %v93_v25 = vpack.c.bf16 %v92_v10, %v92_v10 }
  0x19   :  { %v1341_v19 = vld [vmem:[#allocation8 + $0xf0] sm:$0xf0]  ;;  %v1468_v20 = vor.u32 %v1805_v17, %v1467_v14  ;;  %v1803_v22 = vld [vmem:[#allocation8 + $0x1e4] sm:$0xf]  ;;  %v1323_v24 = vld [vmem:[#allocation8 + $0xc0] sm:$0xf] }
  0x1a   :  { %v1344_v21 = vor.u32 %v1771_v18, %v1341_v19  ;;  %v1469_v23 = vld [vmem:[#allocation8 + $0x1f0] sm:$0xf0]  ;;  %552 = vmatpush.bf16.msra.mxu2 %v1340_v16  ;;  %v1769_v27 = vld [vmem:[#allocation8 + $0xcc] sm:$0xf0]  ;;  %v1451_v28 = vld [vmem:[#allocation8 + $0x1c0] sm:$0xf] }
  0x1b   :  { %v1472_v26 = vor.u32 %v1803_v22, %v1469_v23  ;;  %v1801_v29 = vld [vmem:[#allocation8 + $0x1cc] sm:$0xf0]  ;;  %135 = vmatpush.bf16.msra.mxu0 %v1210_v11  ;;  %565 = vmatpush.bf16.msra.mxu3 %v1468_v20  ;;  %v1324_v30 = vor.u32 %v1769_v27, %v1323_v24  ;;  %v1767_v32 = vld [vmem:[#allocation8 + $0xc4] sm:$0xf]  ;;  %v1325_v33 = vld [vmem:[#allocation8 + $0xd0] sm:$0xf0] }
  0x1c   :  { %v1452_v31 = vor.u32 %v1801_v29, %v1451_v28  ;;  %v1799_v34 = vld [vmem:[#allocation8 + $0x1c4] sm:$0xf]  ;;  %148 = vmatpush.bf16.msra.mxu1 %v1214_v15  ;;  %v1328_v35 = vor.u32 %v1767_v32, %v1325_v33  ;;  %v1453_v36 = vld [vmem:[#allocation8 + $0x1d0] sm:$0xf0]  ;;  %v1307_v37 = vld [vmem:[#allocation8 + $0xa0] sm:$0xf] }
  0x1d   :  { %v1765_v38 = vld [vmem:[#allocation8 + $0xac] sm:$0xf0]  ;;  %v1456_v39 = vor.u32 %v1799_v34, %v1453_v36  ;;  %v1435_v40 = vld [vmem:[#allocation8 + $0x1a0] sm:$0xf]  ;;  %v1763_v42 = vld [vmem:[#allocation8 + $0xa4] sm:$0xf] }
  0x1e   :  { %v1797_v41 = vld [vmem:[#allocation8 + $0x1ac] sm:$0xf0]  ;;  %1223 = vmatmul.msk.bf16.vlgmr.msra.gmra.mxu0 %vm124_vm0, %v93_v25  ;;  %553 = vmatpush.bf16.msra.mxu2 %v1324_v30  ;;  %v1308_v43 = vor.u32 %v1765_v38, %v1307_v37  ;;  %v1309_v44 = vld [vmem:[#allocation8 + $0xb0] sm:$0xf0]  ;;  %v1795_v45 = vld [vmem:[#allocation8 + $0x1a4] sm:$0xf] }
  0x1f   :  { %578 = vmatpush.bf16.msrb.mxu0 %v1344_v21  ;;  %v1437_v46 = vld [vmem:[#allocation8 + $0x1b0] sm:$0xf0]  ;;  %1224 = vmatmul.msk.bf16.vlgmr.msra.gmra.mxu1 %vm124_vm0, %v93_v25  ;;  %v1436_v47 = vor.u32 %v1797_v41, %v1435_v40  ;;  %v1291_v48 = vld [vmem:[#allocation8 + $0x80] sm:$0xf]  ;;  %v1761_v49 = vld [vmem:[#allocation8 + $0x8c] sm:$0xf0]  ;;  %v1312_v50 = vor.u32 %v1763_v42, %v1309_v44 }
  0x20   :  { %591 = vmatpush.bf16.msrb.mxu1 %v1472_v26  ;;  %566 = vmatpush.bf16.msra.mxu3 %v1452_v31  ;;  %v1419_v51 = vld [vmem:[#allocation8 + $0x180] sm:$0xf]  ;;  %v1793_v52 = vld [vmem:[#allocation8 + $0x18c] sm:$0xf0]  ;;  %v1440_v53 = vor.u32 %v1795_v45, %v1437_v46  ;;  %v1759_v54 = vld [vmem:[#allocation8 + $0x84] sm:$0xf]  ;;  %v1292_v56 = vor.u32 %v1761_v49, %v1291_v48 }
  0x21   :  { %v1293_v55 = vld [vmem:[#allocation8 + $0x90] sm:$0xf0]  ;;  %v1791_v57 = vld [vmem:[#allocation8 + $0x184] sm:$0xf]  ;;  %v1420_v59 = vor.u32 %v1793_v52, %v1419_v51  ;;  %v1275_v60 = vld [vmem:[#allocation8 + $0x60] sm:$0xf] }
  0x22   :  { %554 = vmatpush.bf16.msra.mxu2 %v1308_v43  ;;  %v1421_v58 = vld [vmem:[#allocation8 + $0x190] sm:$0xf0]  ;;  %v1757_v61 = vld [vmem:[#allocation8 + $0x6c] sm:$0xf0]  ;;  %v1296_v62 = vor.u32 %v1759_v54, %v1293_v55  ;;  %v1403_v63 = vld [vmem:[#allocation8 + $0x160] sm:$0xf] }
  0x23   :  { %579 = vmatpush.bf16.msrb.mxu0 %v1328_v35  ;;  %v1789_v0 = vld [vmem:[#allocation8 + $0x16c] sm:$0xf0]  ;;  %v1424_v1 = vor.u32 %v1791_v57, %v1421_v58  ;;  %v1755_v2 = vld [vmem:[#allocation8 + $0x64] sm:$0xf]  ;;  %v1277_v3 = vld [vmem:[#allocation8 + $0x70] sm:$0xf0]  ;;  %v1276_v4 = vor.u32 %v1757_v61, %v1275_v60 }
  0x24   :  { %592 = vmatpush.bf16.msrb.mxu1 %v1456_v39  ;;  %567 = vmatpush.bf16.msra.mxu3 %v1436_v47  ;;  %v1787_v5 = vld [vmem:[#allocation8 + $0x164] sm:$0xf]  ;;  %v1405_v6 = vld [vmem:[#allocation8 + $0x170] sm:$0xf0]  ;;  %v1404_v7 = vor.u32 %v1789_v0, %v1403_v63  ;;  %v1259_v8 = vld [vmem:[#allocation8 + $0x40] sm:$0xf]  ;;  %v1280_v10 = vor.u32 %v1755_v2, %v1277_v3 }
  0x25   :  { %v1753_v9 = vld [vmem:[#allocation8 + $0x4c] sm:$0xf0]  ;;  %v1387_v11 = vld [vmem:[#allocation8 + $0x140] sm:$0xf]  ;;  %v1408_v13 = vor.u32 %v1787_v5, %v1405_v6  ;;  %v1751_v14 = vld [vmem:[#allocation8 + $0x44] sm:$0xf] }
  0x26   :  { %555 = vmatpush.bf16.msra.mxu2 %v1292_v56  ;;  %v1785_v12 = vld [vmem:[#allocation8 + $0x14c] sm:$0xf0]  ;;  %v1261_v15 = vld [vmem:[#allocation8 + $0x50] sm:$0xf0]  ;;  %v1260_v16 = vor.u32 %v1753_v9, %v1259_v8  ;;  %v1783_v17 = vld [vmem:[#allocation8 + $0x144] sm:$0xf] }
  0x27   :  { %580 = vmatpush.bf16.msrb.mxu0 %v1312_v50  ;;  %v1389_v18 = vld [vmem:[#allocation8 + $0x150] sm:$0xf0]  ;;  %v1388_v19 = vor.u32 %v1785_v12, %v1387_v11  ;;  %v1243_v20 = vld [vmem:[#allocation8 + $0x20] sm:$0xf]  ;;  %v1749_v21 = vld [vmem:[#allocation8 + $0x2c] sm:$0xf0]  ;;  %v1264_v22 = vor.u32 %v1751_v14, %v1261_v15 }
  0x28   :  { %593 = vmatpush.bf16.msrb.mxu1 %v1440_v53  ;;  %568 = vmatpush.bf16.msra.mxu3 %v1420_v59  ;;  %v1371_v23 = vld [vmem:[#allocation8 + $0x120] sm:$0xf]  ;;  %v1781_v24 = vld [vmem:[#allocation8 + $0x12c] sm:$0xf0]  ;;  %v1392_v25 = vor.u32 %v1783_v17, %v1389_v18  ;;  %v1747_v26 = vld [vmem:[#allocation8 + $0x24] sm:$0xf]  ;;  %v1244_v29 = vor.u32 %v1749_v21, %v1243_v20 }
  0x29   :  { %v1245_v27 = vld [vmem:[#allocation8 + $0x30] sm:$0xf0]  ;;  %v1779_v28 = vld [vmem:[#allocation8 + $0x124] sm:$0xf]  ;;  %v1227_v31 = vld [vmem:[#allocation8] sm:$0xf]  ;;  %v1372_v33 = vor.u32 %v1781_v24, %v1371_v23 }
  0x2a   :  { %556 = vmatpush.bf16.msra.mxu2 %v1276_v4  ;;  %v1373_v30 = vld [vmem:[#allocation8 + $0x130] sm:$0xf0]  ;;  %v1745_v32 = vld [vmem:[#allocation8 + $0xc] sm:$0xf0]  ;;  %v1355_v34 = vld [vmem:[#allocation8 + $0x100] sm:$0xf]  ;;  %v1248_v37 = vor.u32 %v1747_v26, %v1245_v27 }
  0x2b   :  { %581 = vmatpush.bf16.msrb.mxu0 %v1296_v62  ;;  %v1777_v35 = vld [vmem:[#allocation8 + $0x10c] sm:$0xf0]  ;;  %v1743_v36 = vld [vmem:[#allocation8 + $0x4] sm:$0xf]  ;;  %v1229_v38 = vld [vmem:[#allocation8 + $0x10] sm:$0xf0]  ;;  %v1376_v41 = vor.u32 %v1779_v28, %v1373_v30  ;;  %v1228_v45 = vor.u32 %v1745_v32, %v1227_v31 }
  0x2c   :  { %594 = vmatpush.bf16.msrb.mxu1 %v1424_v1  ;;  %569 = vmatpush.bf16.msra.mxu3 %v1404_v7  ;;  %v1347_v39 = vld [vmem:[#allocation8 + $0xe8] sm:$0xf]  ;;  %v1774_v40 = vld [vmem:[#allocation8 + $0xf4] sm:$0xf0]  ;;  %v1775_v42 = vld [vmem:[#allocation8 + $0x104] sm:$0xf]  ;;  %v1356_v49 = vor.u32 %v1777_v35, %v1355_v34  ;;  %v1232_v53 = vor.u32 %v1743_v36, %v1229_v38 }
  0x2d   :  { %v1475_v43 = vld [vmem:[#allocation8 + $0x1e8] sm:$0xf]  ;;  %v1806_v44 = vld [vmem:[#allocation8 + $0x1f4] sm:$0xf0]  ;;  %v1357_v46 = vld [vmem:[#allocation8 + $0x110] sm:$0xf0]  ;;  %v1348_v50 = vor.u32 %v1774_v40, %v1347_v39 }
  0x2e   :  { %557 = vmatpush.bf16.msra.mxu2 %v1260_v16  ;;  %v1772_v47 = vld [vmem:[#allocation8 + $0xec] sm:$0xf]  ;;  %v1349_v48 = vld [vmem:[#allocation8 + $0xf8] sm:$0xf0]  ;;  %v1476_v54 = vor.u32 %v1806_v44, %v1475_v43  ;;  %v1331_v55 = vld [vmem:[#allocation8 + $0xc8] sm:$0xf]  ;;  %v1360_v57 = vor.u32 %v1775_v42, %v1357_v46 }
  0x2f   :  { %582 = vmatpush.bf16.msrb.mxu0 %v1280_v10  ;;  %v1804_v51 = vld [vmem:[#allocation8 + $0x1ec] sm:$0xf]  ;;  %v1477_v52 = vld [vmem:[#allocation8 + $0x1f8] sm:$0xf0]  ;;  %v1770_v56 = vld [vmem:[#allocation8 + $0xd4] sm:$0xf0]  ;;  %v1352_v58 = vor.u32 %v1772_v47, %v1349_v48 }
  0x30   :  { %595 = vmatpush.bf16.msrb.mxu1 %v1408_v13  ;;  %570 = vmatpush.bf16.msra.mxu3 %v1388_v19  ;;  %v1459_v59 = vld [vmem:[#allocation8 + $0x1c8] sm:$0xf]  ;;  %v1802_v60 = vld [vmem:[#allocation8 + $0x1d4] sm:$0xf0]  ;;  %v1480_v61 = vor.u32 %v1804_v51, %v1477_v52  ;;  %v1768_v62 = vld [vmem:[#allocation8 + $0xcc] sm:$0xf]  ;;  %v1332_v0 = vor.u32 %v1770_v56, %v1331_v55 }
  0x31   :  { %v1333_v63 = vld [vmem:[#allocation8 + $0xd8] sm:$0xf0]  ;;  %v1800_v1 = vld [vmem:[#allocation8 + $0x1cc] sm:$0xf]  ;;  %v1460_v3 = vor.u32 %v1802_v60, %v1459_v59  ;;  %v1315_v6 = vld [vmem:[#allocation8 + $0xa8] sm:$0xf] }
  0x32   :  { %558 = vmatpush.bf16.msra.mxu2 %v1244_v29  ;;  %v1461_v2 = vld [vmem:[#allocation8 + $0x1d8] sm:$0xf0]  ;;  %v1336_v4 = vor.u32 %v1768_v62, %v1333_v63  ;;  %v1766_v7 = vld [vmem:[#allocation8 + $0xb4] sm:$0xf0]  ;;  %v1443_v8 = vld [vmem:[#allocation8 + $0x1a8] sm:$0xf] }
  0x33   :  { %583 = vmatpush.bf16.msrb.mxu0 %v1264_v22  ;;  %v1464_v5 = vor.u32 %v1800_v1, %v1461_v2  ;;  %v1316_v9 = vor.u32 %v1766_v7, %v1315_v6  ;;  %v1798_v10 = vld [vmem:[#allocation8 + $0x1b4] sm:$0xf0]  ;;  %v1764_v11 = vld [vmem:[#allocation8 + $0xac] sm:$0xf]  ;;  %v1317_v12 = vld [vmem:[#allocation8 + $0xb8] sm:$0xf0] }
  0x34   :  { %596 = vmatpush.bf16.msrb.mxu1 %v1392_v25  ;;  %571 = vmatpush.bf16.msra.mxu3 %v1372_v33  ;;  %v1444_v13 = vor.u32 %v1798_v10, %v1443_v8  ;;  %v1320_v14 = vor.u32 %v1764_v11, %v1317_v12  ;;  %v1796_v15 = vld [vmem:[#allocation8 + $0x1ac] sm:$0xf]  ;;  %v1445_v16 = vld [vmem:[#allocation8 + $0x1b8] sm:$0xf0]  ;;  %v1299_v18 = vld [vmem:[#allocation8 + $0x88] sm:$0xf] }
  0x35   :  { %v1448_v17 = vor.u32 %v1796_v15, %v1445_v16  ;;  %v1762_v19 = vld [vmem:[#allocation8 + $0x94] sm:$0xf0]  ;;  %v1427_v20 = vld [vmem:[#allocation8 + $0x188] sm:$0xf]  ;;  %v1760_v23 = vld [vmem:[#allocation8 + $0x8c] sm:$0xf] }
  0x36   :  { %559 = vmatpush.bf16.msra.mxu2 %v1228_v45  ;;  %v1300_v21 = vor.u32 %v1762_v19, %v1299_v18  ;;  %v1794_v22 = vld [vmem:[#allocation8 + $0x194] sm:$0xf0]  ;;  %v1301_v24 = vld [vmem:[#allocation8 + $0x98] sm:$0xf0]  ;;  %v1792_v27 = vld [vmem:[#allocation8 + $0x18c] sm:$0xf] }
  0x37   :  { %584 = vmatpush.bf16.msrb.mxu0 %v1248_v37  ;;  %v1428_v25 = vor.u32 %v1794_v22, %v1427_v20  ;;  %v1304_v26 = vor.u32 %v1760_v23, %v1301_v24  ;;  %v1429_v28 = vld [vmem:[#allocation8 + $0x198] sm:$0xf0]  ;;  %v1283_v30 = vld [vmem:[#allocation8 + $0x68] sm:$0xf]  ;;  %v1758_v31 = vld [vmem:[#allocation8 + $0x74] sm:$0xf0] }
  0x38   :  { %597 = vmatpush.bf16.msrb.mxu1 %v1376_v41  ;;  %572 = vmatpush.bf16.msra.mxu3 %v1356_v49  ;;  %v1432_v29 = vor.u32 %v1792_v27, %v1429_v28  ;;  %v1411_v32 = vld [vmem:[#allocation8 + $0x168] sm:$0xf]  ;;  %v1284_v33 = vor.u32 %v1758_v31, %v1283_v30  ;;  %v1790_v34 = vld [vmem:[#allocation8 + $0x174] sm:$0xf0]  ;;  %v1756_v35 = vld [vmem:[#allocation8 + $0x6c] sm:$0xf] }
  0x39   :  { %v1285_v36 = vld [vmem:[#allocation8 + $0x78] sm:$0xf0]  ;;  %v1412_v37 = vor.u32 %v1790_v34, %v1411_v32  ;;  %v1788_v39 = vld [vmem:[#allocation8 + $0x16c] sm:$0xf]  ;;  %v1267_v42 = vld [vmem:[#allocation8 + $0x48] sm:$0xf] }
  0x3a   :  { %604 = vmatpush.bf16.msrb.mxu2 %v1348_v50  ;;  %v1288_v38 = vor.u32 %v1756_v35, %v1285_v36  ;;  %v1413_v40 = vld [vmem:[#allocation8 + $0x178] sm:$0xf0]  ;;  %v1754_v43 = vld [vmem:[#allocation8 + $0x54] sm:$0xf0]  ;;  %v1395_v44 = vld [vmem:[#allocation8 + $0x148] sm:$0xf] }
  0x3b   :  { %585 = vmatpush.bf16.msrb.mxu0 %v1232_v53  ;;  %v1416_v41 = vor.u32 %v1788_v39, %v1413_v40  ;;  %v1268_v45 = vor.u32 %v1754_v43, %v1267_v42  ;;  %v1786_v46 = vld [vmem:[#allocation8 + $0x154] sm:$0xf0]  ;;  %v1752_v47 = vld [vmem:[#allocation8 + $0x4c] sm:$0xf]  ;;  %v1269_v48 = vld [vmem:[#allocation8 + $0x58] sm:$0xf0] }
  0x3c   :  { %617 = vmatpush.bf16.msrb.mxu3 %v1476_v54  ;;  %598 = vmatpush.bf16.msrb.mxu1 %v1360_v57  ;;  %v1396_v49 = vor.u32 %v1786_v46, %v1395_v44  ;;  %v1272_v50 = vor.u32 %v1752_v47, %v1269_v48  ;;  %v1784_v51 = vld [vmem:[#allocation8 + $0x14c] sm:$0xf]  ;;  %v1397_v52 = vld [vmem:[#allocation8 + $0x158] sm:$0xf0]  ;;  %v1251_v53 = vld [vmem:[#allocation8 + $0x28] sm:$0xf] }
  0x3d   :  { %v1400_v54 = vor.u32 %v1784_v51, %v1397_v52  ;;  %v1750_v55 = vld [vmem:[#allocation8 + $0x34] sm:$0xf0]  ;;  %v1379_v56 = vld [vmem:[#allocation8 + $0x128] sm:$0xf]  ;;  %v1748_v59 = vld [vmem:[#allocation8 + $0x2c] sm:$0xf] }
  0x3e   :  { %605 = vmatpush.bf16.msrb.mxu2 %v1332_v0  ;;  %v1782_v57 = vld [vmem:[#allocation8 + $0x134] sm:$0xf0]  ;;  %v1253_v60 = vld [vmem:[#allocation8 + $0x38] sm:$0xf0]  ;;  %v1235_v1 = vld [vmem:[#allocation8 + $0x8] sm:$0xf] }
  0x3f   :  { %630 = vmatpush.bf16.msra.mxu0 %v1352_v58  ;;  %v1252_v58 = vor.u32 %v1750_v55, %v1251_v53  ;;  %v1380_v62 = vor.u32 %v1782_v57, %v1379_v56  ;;  %v1256_v63 = vor.u32 %v1748_v59, %v1253_v60  ;;  %v1381_v0 = vld [vmem:[#allocation8 + $0x138] sm:$0xf0]  ;;  %v1746_v2 = vld [vmem:[#allocation8 + $0x14] sm:$0xf0]  ;;  %v1744_v6 = vld [vmem:[#allocation8 + $0xc] sm:$0xf] }
  0x40   :  { %643 = vmatpush.bf16.msra.mxu1 %v1480_v61  ;;  %618 = vmatpush.bf16.msrb.mxu3 %v1460_v3  ;;  %v1780_v61 = vld [vmem:[#allocation8 + $0x12c] sm:$0xf]  ;;  %v1237_v7 = vld [vmem:[#allocation8 + $0x18] sm:$0xf0]  ;;  %v1236_v10 = vor.u32 %v1746_v2, %v1235_v1  ;;  %v1603_v20 = vld [vmem:[#allocation9 + $0xf0] sm:$0xf] }
  0x41   :  { %v1384_v3 = vor.u32 %v1780_v61, %v1381_v0  ;;  %v1776_v8 = vld [vmem:[#allocation8 + $0x10c] sm:$0xf]  ;;  %v1240_v12 = vor.u32 %v1744_v6, %v1237_v7  ;;  %v1539_v22 = vld [vmem:[#allocation9 + $0x70] sm:$0xf]  ;;  %v1822_v24 = vld [vmem:[#allocation9 + $0x74] sm:$0xf0] }
  0x42   :  { %606 = vmatpush.bf16.msrb.mxu2 %v1316_v9  ;;  %v1365_v9 = vld [vmem:[#allocation8 + $0x118] sm:$0xf0]  ;;  %v1667_v28 = vld [vmem:[#allocation9 + $0x170] sm:$0xf]  ;;  %v1836_v34 = vld [vmem:[#allocation9 + $0xe4] sm:$0xf0]  ;;  %v1540_v35 = vor.u32 %v1822_v24, %v1539_v22 }
  0x43   :  { %631 = vmatpush.bf16.msra.mxu0 %v1336_v4  ;;  %v1363_v4 = vld [vmem:[#allocation8 + $0x108] sm:$0xf]  ;;  %v1723_v40 = vld [vmem:[#allocation9 + $0x1e0] sm:$0xf]  ;;  %v1587_v48 = vld [vmem:[#allocation9 + $0xd0] sm:$0xf] }
  0x44   :  { %644 = vmatpush.bf16.msra.mxu1 %v1464_v5  ;;  %619 = vmatpush.bf16.msrb.mxu3 %v1444_v13  ;;  %v1778_v5 = vld [vmem:[#allocation8 + $0x114] sm:$0xf0]  ;;  %v1368_v13 = vor.u32 %v1776_v8, %v1365_v9  ;;  %v1868_v42 = vld [vmem:[#allocation9 + $0x1e4] sm:$0xf0]  ;;  %v1659_v43 = vld [vmem:[#allocation9 + $0x160] sm:$0xf] }
  0x45   :  { %v1364_v11 = vor.u32 %v1778_v5, %v1363_v4  ;;  %v1852_v44 = vld [vmem:[#allocation9 + $0x164] sm:$0xf0]  ;;  %v1523_v51 = vld [vmem:[#allocation9 + $0x50] sm:$0xf]  ;;  %v1818_v52 = vld [vmem:[#allocation9 + $0x54] sm:$0xf0]  ;;  %v1724_v53 = vor.u32 %v1868_v42, %v1723_v40 }
  0x46   :  { %607 = vmatpush.bf16.msrb.mxu2 %v1300_v21  ;;  %v1838_v21 = vld [vmem:[#allocation9 + $0xf4] sm:$0xf0]  ;;  %v1660_v55 = vor.u32 %v1852_v44, %v1659_v43  ;;  %v1651_v57 = vld [vmem:[#allocation9 + $0x150] sm:$0xf]  ;;  %v1579_v60 = vld [vmem:[#allocation9 + $0xc0] sm:$0xf] }
  0x47   :  { %632 = vmatpush.bf16.msra.mxu0 %v1320_v14  ;;  %v98_v14 = vld [vmem:[#allocation6] sm:$0x3]  ;;  %v1604_v32 = vor.u32 %v1838_v21, %v1603_v20  ;;  %v1866_v56 = vld [vmem:[#allocation9 + $0x1d4] sm:$0xf0]  ;;  %v1832_v61 = vld [vmem:[#allocation9 + $0xc4] sm:$0xf0] }
  0x48   :  { %645 = vmatpush.bf16.msra.mxu1 %v1448_v17  ;;  %620 = vmatpush.bf16.msrb.mxu3 %v1428_v25  ;;  %v100_v15 = vperm.slane %v98_v14, 0  ;;  %v101_v16 = vperm.slane %v98_v14, 1  ;;  %v1731_v25 = vld [vmem:[#allocation9 + $0x1f0] sm:$0xf]  ;;  %v1816_v0 = vld [vmem:[#allocation9 + $0x44] sm:$0xf0]  ;;  %v1580_v7 = vor.u32 %v1832_v61, %v1579_v60 }
  0x49   :  { %v1707_v2 = vld [vmem:[#allocation9 + $0x1c0] sm:$0xf]  ;;  %v1864_v4 = vld [vmem:[#allocation9 + $0x1c4] sm:$0xf0]  ;;  %v1571_v8 = vld [vmem:[#allocation9 + $0xb0] sm:$0xf] }
  0x4a   :  { %608 = vmatpush.bf16.msrb.mxu2 %v1284_v33  ;;  %v1595_v33 = vld [vmem:[#allocation9 + $0xe0] sm:$0xf]  ;;  %v1848_v6 = vld [vmem:[#allocation9 + $0x144] sm:$0xf0]  ;;  %v1597_v42 = vld [vmem:[#allocation9 + $0xe8] sm:$0xf0] }
  0x4b   :  { %633 = vmatpush.bf16.msra.mxu0 %v1304_v26  ;;  %v1870_v26 = vld [vmem:[#allocation9 + $0x1f4] sm:$0xf0]  ;;  %v1596_v47 = vor.u32 %v1836_v34, %v1595_v33  ;;  %v1643_v5 = vld [vmem:[#allocation9 + $0x140] sm:$0xf]  ;;  %v1828_v20 = vld [vmem:[#allocation9 + $0xa4] sm:$0xf0] }
  0x4c   :  { %646 = vmatpush.bf16.msra.mxu1 %v1432_v29  ;;  %621 = vmatpush.bf16.msrb.mxu3 %v1412_v37  ;;  %v1854_v29 = vld [vmem:[#allocation9 + $0x174] sm:$0xf0]  ;;  %v1531_v37 = vld [vmem:[#allocation9 + $0x60] sm:$0xf]  ;;  %v1732_v39 = vor.u32 %v1870_v26, %v1731_v25  ;;  %v1644_v14 = vor.u32 %v1848_v6, %v1643_v5  ;;  %v1812_v22 = vld [vmem:[#allocation9 + $0x24] sm:$0xf0] }
  0x4d   :  { %v1499_v21 = vld [vmem:[#allocation9 + $0x20] sm:$0xf]  ;;  %v1555_v25 = vld [vmem:[#allocation9 + $0x90] sm:$0xf]  ;;  %v1824_v34 = vld [vmem:[#allocation9 + $0x84] sm:$0xf0] }
  0x4e   :  { %609 = vmatpush.bf16.msrb.mxu2 %v1268_v45  ;;  %v1500_v26 = vor.u32 %v1812_v22, %v1499_v21  ;;  %v1821_v44 = vld [vmem:[#allocation9 + $0x74] sm:$0xf]  ;;  %v1858_v60 = vld [vmem:[#allocation9 + $0x194] sm:$0xf0]  ;;  %v1525_v5 = vld [vmem:[#allocation9 + $0x58] sm:$0xf0] }
  0x4f   :  { %634 = vmatpush.bf16.msra.mxu0 %v1288_v38  ;;  %v1820_v38 = vld [vmem:[#allocation9 + $0x64] sm:$0xf0]  ;;  %v1827_v22 = vld [vmem:[#allocation9 + $0xa4] sm:$0xf]  ;;  %vm1164_vm1 = vcmask 31744   ;;  %s1195_s11 = sshll.u32 %s2125_s8, 4  ;;  %s1196_s11 = int_to_ptr.hbm [resolvable:$true] %s1195_s11 }
  0x50   :  { %647 = vmatpush.bf16.msra.mxu1 %v1416_v41  ;;  %622 = vmatpush.bf16.msrb.mxu3 %v1396_v49  ;;  %v1668_v41 = vor.u32 %v1854_v29, %v1667_v28  ;;  %v1834_v49 = vld [vmem:[#allocation9 + $0xd4] sm:$0xf0]  ;;  %v1491_v28 = vld [vmem:[#allocation9 + $0x10] sm:$0xf] }
  0x51   :  { %v1588_v59 = vor.u32 %v1834_v49, %v1587_v48  ;;  %v1810_v29 = vld [vmem:[#allocation9 + $0x14] sm:$0xf0]  ;;  %v1860_v48 = vld [vmem:[#allocation9 + $0x1a4] sm:$0xf0] }
  0x52   :  { %610 = vmatpush.bf16.msrb.mxu2 %v1252_v58  ;;  %v1850_v58 = vld [vmem:[#allocation9 + $0x154] sm:$0xf0]  ;;  %v1492_v33 = vor.u32 %v1810_v29, %v1491_v28  ;;  %v1840_v28 = vld [vmem:[#allocation9 + $0x104] sm:$0xf0] }
  0x53   :  { %635 = vmatpush.bf16.msra.mxu0 %v1272_v50  ;;  %v1532_v50 = vor.u32 %v1820_v38, %v1531_v37  ;;  %v1837_v37 = vld [vmem:[#allocation9 + $0xf4] sm:$0xf]  ;;  %v1605_v38 = vld [vmem:[#allocation9 + $0xf8] sm:$0xf0] }
  0x54   :  { %648 = vmatpush.bf16.msra.mxu1 %v1400_v54  ;;  %623 = vmatpush.bf16.msrb.mxu3 %v1380_v62  ;;  %v1715_v54 = vld [vmem:[#allocation9 + $0x1d0] sm:$0xf]  ;;  %v1524_v62 = vor.u32 %v1818_v52, %v1523_v51  ;;  %v1608_v40 = vor.u32 %v1837_v37, %v1605_v38  ;;  %v1589_v51 = vld [vmem:[#allocation9 + $0xd8] sm:$0xf0]  ;;  %v1825_v38 = vld [vmem:[#allocation9 + $0x94] sm:$0xf] }
  0x55   :  { %v1716_v1 = vor.u32 %v1866_v56, %v1715_v54  ;;  %v1846_v54 = vld [vmem:[#allocation9 + $0x134] sm:$0xf0]  ;;  %v1819_v56 = vld [vmem:[#allocation9 + $0x64] sm:$0xf] }
  0x56   :  { %611 = vmatpush.bf16.msrb.mxu2 %v1236_v10  ;;  %v1830_v10 = vld [vmem:[#allocation9 + $0xb4] sm:$0xf0] }
  0x57   :  { %636 = vmatpush.bf16.msra.mxu0 %v1256_v63  ;;  %v1515_v63 = vld [vmem:[#allocation9 + $0x40] sm:$0xf] }
  0x58   :  { %649 = vmatpush.bf16.msra.mxu1 %v1384_v3  ;;  %624 = vmatpush.bf16.msrb.mxu3 %v1364_v11  ;;  %v1652_v3 = vor.u32 %v1850_v58, %v1651_v57  ;;  %v1516_v9 = vor.u32 %v1816_v0, %v1515_v63  ;;  %v1507_v11 = vld [vmem:[#allocation9 + $0x30] sm:$0xf]  ;;  %v1533_v57 = vld [vmem:[#allocation9 + $0x68] sm:$0xf0] }
  0x59   :  { %v1536_v58 = vor.u32 %v1819_v56, %v1533_v57  ;;  %v1581_v63 = vld [vmem:[#allocation9 + $0xc8] sm:$0xf0]  ;;  %v1493_v56 = vld [vmem:[#allocation9 + $0x18] sm:$0xf0] }
  0x5b   :  { %637 = vmatpush.bf16.msra.mxu0 %v1240_v12  ;;  %v1814_v12 = vld [vmem:[#allocation9 + $0x34] sm:$0xf0] }
  0x5c   :  { %650 = vmatpush.bf16.msra.mxu1 %v1368_v13  ;;  %v1708_v13 = vor.u32 %v1864_v4, %v1707_v2  ;;  %v1844_v2 = vld [vmem:[#allocation9 + $0x124] sm:$0xf0]  ;;  %v1817_v4 = vld [vmem:[#allocation9 + $0x54] sm:$0xf] }
  0x5d   :  { %v1528_v6 = vor.u32 %v1817_v4, %v1525_v5  ;;  %v1645_v5 = vld [vmem:[#allocation9 + $0x148] sm:$0xf0] }
  0x9b   :  { %v137_v17 = vpop.f32.mrf.mxu0 }
  0x9c   :  { %v138_v18 = vadd.f32 %v137_v17, %v100_v15  ;;  %v150_v19 = vpop.f32.mrf.mxu1  ;;  %v1699_v15 = vld [vmem:[#allocation9 + $0x1b0] sm:$0xf]  ;;  %v1572_v17 = vor.u32 %v1830_v10, %v1571_v8  ;;  %v1856_v8 = vld [vmem:[#allocation9 + $0x184] sm:$0xf0]  ;;  %v1829_v10 = vld [vmem:[#allocation9 + $0xb4] sm:$0xf] }
  0x9d   :  { %v151_v23 = vadd.f32 %v150_v19, %v101_v16  ;;  %v1862_v16 = vld [vmem:[#allocation9 + $0x1b4] sm:$0xf0]  ;;  %v1508_v19 = vor.u32 %v1814_v12, %v1507_v11  ;;  %v1573_v11 = vld [vmem:[#allocation9 + $0xb8] sm:$0xf0]  ;;  %v1869_v12 = vld [vmem:[#allocation9 + $0x1f4] sm:$0xf] }
  0x9e   :  { %v154_v27 = vmax.f32 %v138_v18, 0.0  ;;  %v1563_v18 = vld [vmem:[#allocation9 + $0xa0] sm:$0xf] }
  0x9f   :  { %v155_v30 = vmax.f32 %v151_v23, 0.0  ;;  %v1700_v23 = vor.u32 %v1862_v16, %v1699_v15  ;;  %v1564_v24 = vor.u32 %v1828_v20, %v1563_v18  ;;  %v1619_v15 = vld [vmem:[#allocation9 + $0x110] sm:$0xf]  ;;  %v1842_v16 = vld [vmem:[#allocation9 + $0x114] sm:$0xf0] }
  0xa0   :  { %v2087_v31 = vpack.c.bf16 %v154_v27, %v154_v27  ;;  %v1826_v27 = vld [vmem:[#allocation9 + $0x94] sm:$0xf0]  ;;  %v1620_v18 = vor.u32 %v1842_v16, %v1619_v15  ;;  %v1517_v20 = vld [vmem:[#allocation9 + $0x48] sm:$0xf0]  ;;  %v1685_v15 = vld [vmem:[#allocation9 + $0x198] sm:$0xf0] }
  0xa1   :  { %v2089_v36 = vpack.c.bf16 %v155_v30, %v155_v30  ;;  %v1556_v30 = vor.u32 %v1826_v27, %v1555_v25  ;;  %v1611_v27 = vld [vmem:[#allocation9 + $0x100] sm:$0xf]  ;;  %v1843_v16 = vld [vmem:[#allocation9 + $0x124] sm:$0xf] }
  0xa2   :  { %560 = vmatmul.bf16.vlgmr.msra.gmra.mxu2 %v2087_v31  ;;  %586 = vmatmul.bf16.vlgmr.msrb.gmra.mxu0 %v2087_v31 }
  0xa3   :  { %573 = vmatmul.bf16.vlgmr.msra.gmra.mxu3 %v2089_v36  ;;  %599 = vmatmul.bf16.vlgmr.msrb.gmra.mxu1 %v2089_v36  ;;  %v139_v45 = vpop.f32.mrf.mxu0 }
  0xa4   :  { %v152_v46 = vpop.f32.mrf.mxu1  ;;  %1067 = vmatpush.bf16.msra.mxu3 %v1604_v32  ;;  %1054 = vmatpush.bf16.msra.mxu2 %v1540_v35  ;;  %v1547_v32 = vld [vmem:[#allocation9 + $0x80] sm:$0xf]  ;;  %v1808_v35 = vld [vmem:[#allocation9 + $0x4] sm:$0xf0]  ;;  %v1541_v45 = vld [vmem:[#allocation9 + $0x78] sm:$0xf0] }
  0xa5   :  { %1093 = vmatpush.bf16.msrb.mxu1 %v1732_v39  ;;  %1080 = vmatpush.bf16.msrb.mxu0 %v1668_v41  ;;  %v1835_v41 = vld [vmem:[#allocation9 + $0xe4] sm:$0xf]  ;;  %v1544_v46 = vor.u32 %v1821_v44, %v1541_v45  ;;  %v1501_v44 = vld [vmem:[#allocation9 + $0x28] sm:$0xf0] }
  0xa6   :  { %v1600_v43 = vor.u32 %v1835_v41, %v1597_v42  ;;  %v1717_v41 = vld [vmem:[#allocation9 + $0x1d8] sm:$0xf0]  ;;  %v1851_v45 = vld [vmem:[#allocation9 + $0x164] sm:$0xf] }
  0xa8   :  { %1068 = vmatpush.bf16.msra.mxu3 %v1596_v47  ;;  %1055 = vmatpush.bf16.msra.mxu2 %v1532_v50  ;;  %v1691_v47 = vld [vmem:[#allocation9 + $0x1a0] sm:$0xf]  ;;  %v1833_v50 = vld [vmem:[#allocation9 + $0xd4] sm:$0xf] }
  0xa9   :  { %1094 = vmatpush.bf16.msrb.mxu1 %v1724_v53  ;;  %1081 = vmatpush.bf16.msrb.mxu0 %v1660_v55  ;;  %v1692_v49 = vor.u32 %v1860_v48, %v1691_v47  ;;  %v1592_v52 = vor.u32 %v1833_v50, %v1589_v51  ;;  %v1635_v53 = vld [vmem:[#allocation9 + $0x130] sm:$0xf]  ;;  %v1661_v47 = vld [vmem:[#allocation9 + $0x168] sm:$0xf0]  ;;  %v1863_v51 = vld [vmem:[#allocation9 + $0x1c4] sm:$0xf] }
  0xaa   :  { %v1636_v55 = vor.u32 %v1846_v54, %v1635_v53  ;;  %v1664_v48 = vor.u32 %v1851_v45, %v1661_v47  ;;  %v1549_v50 = vld [vmem:[#allocation9 + $0x88] sm:$0xf0] }
  0xab   :  { %v1709_v53 = vld [vmem:[#allocation9 + $0x1c8] sm:$0xf0] }
  0xac   :  { %1069 = vmatpush.bf16.msra.mxu3 %v1588_v59  ;;  %1056 = vmatpush.bf16.msra.mxu2 %v1524_v62  ;;  %v1683_v59 = vld [vmem:[#allocation9 + $0x190] sm:$0xf]  ;;  %v1831_v62 = vld [vmem:[#allocation9 + $0xc4] sm:$0xf]  ;;  %v1712_v54 = vor.u32 %v1863_v51, %v1709_v53 }
  0xad   :  { %1095 = vmatpush.bf16.msrb.mxu1 %v1716_v1  ;;  %1082 = vmatpush.bf16.msrb.mxu0 %v1652_v3  ;;  %v1684_v61 = vor.u32 %v1858_v60, %v1683_v59  ;;  %v1584_v0 = vor.u32 %v1831_v62, %v1581_v63  ;;  %v1627_v1 = vld [vmem:[#allocation9 + $0x120] sm:$0xf]  ;;  %v1653_v59 = vld [vmem:[#allocation9 + $0x158] sm:$0xf0]  ;;  %v2102_v63 = vld [vmem:[%s2121_s4] sm:$0xf] }
  0xae   :  { %v1628_v3 = vor.u32 %v1844_v2, %v1627_v1  ;;  %v1701_v62 = vld [vmem:[#allocation9 + $0x1b8] sm:$0xf0]  ;;  %v1807_v1 = vld [vmem:[#allocation9 + $0x4] sm:$0xf]  ;;  %v1485_v2 = vld [vmem:[#allocation9 + $0x8] sm:$0xf0] }
  0xaf   :  { %v1488_v4 = vor.u32 %v1807_v1, %v1485_v2  ;;  %v226_v51 = vperm.slane %v2102_v63, 2  ;;  %v2023_v1 = vmov 0.0  }
  0xb0   :  { %1070 = vmatpush.bf16.msra.mxu3 %v1580_v7  ;;  %1057 = vmatpush.bf16.msra.mxu2 %v1516_v9  ;;  %v1675_v7 = vld [vmem:[#allocation9 + $0x180] sm:$0xf]  ;;  %1162 = vst [vmem:[#allocation2] sm:$0xff] %v2023_v1 }
  0xb1   :  { %1096 = vmatpush.bf16.msrb.mxu1 %v1708_v13  ;;  %1083 = vmatpush.bf16.msrb.mxu0 %v1644_v14  ;;  %v1676_v9 = vor.u32 %v1856_v8, %v1675_v7  ;;  %v1576_v13 = vor.u32 %v1829_v10, %v1573_v11  ;;  %v1733_v14 = vld [vmem:[#allocation9 + $0x1f8] sm:$0xf0]  ;;  %v1859_v7 = vld [vmem:[#allocation9 + $0x1a4] sm:$0xf]  ;;  %v1693_v8 = vld [vmem:[#allocation9 + $0x1a8] sm:$0xf0] }
  0xb2   :  { %612 = vmatmul.bf16.vlgmr.msrb.gmra.mxu2 %v2087_v31  ;;  %638 = vmatmul.bf16.vlgmr.msra.gmra.mxu0 %v2087_v31  ;;  %v1483_v31 = vld [vmem:[#allocation9] sm:$0xf]  ;;  %v1696_v10 = vor.u32 %v1859_v7, %v1693_v8  ;;  %v1845_v11 = vld [vmem:[#allocation9 + $0x134] sm:$0xf] }
  0xb3   :  { %625 = vmatmul.bf16.vlgmr.msrb.gmra.mxu3 %v2089_v36  ;;  %651 = vmatmul.bf16.vlgmr.msra.gmra.mxu1 %v2089_v36  ;;  %v1548_v36 = vor.u32 %v1824_v34, %v1547_v32  ;;  %v1484_v39 = vor.u32 %v1808_v35, %v1483_v31  ;;  %v1813_v32 = vld [vmem:[#allocation9 + $0x34] sm:$0xf]  ;;  %v1669_v35 = vld [vmem:[#allocation9 + $0x178] sm:$0xf0] }
  0xb4   :  { %1071 = vmatpush.bf16.msra.mxu3 %v1572_v17  ;;  %1058 = vmatpush.bf16.msra.mxu2 %v1508_v19  ;;  %v1736_v17 = vor.u32 %v1869_v12, %v1733_v14  ;;  %v1815_v19 = vld [vmem:[#allocation9 + $0x44] sm:$0xf]  ;;  %v1853_v34 = vld [vmem:[#allocation9 + $0x174] sm:$0xf]  ;;  %v1637_v12 = vld [vmem:[#allocation9 + $0x138] sm:$0xf0] }
  0xb5   :  { %1097 = vmatpush.bf16.msrb.mxu1 %v1700_v23  ;;  %1084 = vmatpush.bf16.msrb.mxu0 %v1636_v55  ;;  %v1520_v21 = vor.u32 %v1815_v19, %v1517_v20  ;;  %v1565_v23 = vld [vmem:[#allocation9 + $0xa8] sm:$0xf0]  ;;  %v1672_v37 = vor.u32 %v1853_v34, %v1669_v35  ;;  %v1809_v55 = vld [vmem:[#allocation9 + $0x14] sm:$0xf] }
  0xb6   :  { %v1568_v25 = vor.u32 %v1827_v22, %v1565_v23  ;;  %v1496_v57 = vor.u32 %v1809_v55, %v1493_v56  ;;  %v1857_v14 = vld [vmem:[#allocation9 + $0x194] sm:$0xf]  ;;  %v1629_v19 = vld [vmem:[#allocation9 + $0x128] sm:$0xf0]  ;;  %v1855_v22 = vld [vmem:[#allocation9 + $0x184] sm:$0xf] }
  0xb7   :  { %v1677_v23 = vld [vmem:[#allocation9 + $0x188] sm:$0xf0] }
  0xb8   :  { %1072 = vmatpush.bf16.msra.mxu3 %v1564_v24  ;;  %1059 = vmatpush.bf16.msra.mxu2 %v1500_v26  ;;  %v1867_v24 = vld [vmem:[#allocation9 + $0x1e4] sm:$0xf]  ;;  %v1725_v26 = vld [vmem:[#allocation9 + $0x1e8] sm:$0xf0] }
  0xb9   :  { %1098 = vmatpush.bf16.msrb.mxu1 %v1692_v49  ;;  %1085 = vmatpush.bf16.msrb.mxu0 %v1628_v3  ;;  %v1728_v29 = vor.u32 %v1867_v24, %v1725_v26  ;;  %v1823_v49 = vld [vmem:[#allocation9 + $0x84] sm:$0xf]  ;;  %v1632_v24 = vor.u32 %v1843_v16, %v1629_v19  ;;  %v224_v26 = vperm.slane %v2102_v63, 0 }
  0xba   :  { %v1847_v3 = vld [vmem:[#allocation9 + $0x144] sm:$0xf] }
  0xbc   :  { %1073 = vmatpush.bf16.msra.mxu3 %v1556_v30  ;;  %1060 = vmatpush.bf16.msra.mxu2 %v1492_v33  ;;  %v1612_v30 = vor.u32 %v1840_v28, %v1611_v27  ;;  %v1509_v33 = vld [vmem:[#allocation9 + $0x38] sm:$0xf0]  ;;  %v1841_v27 = vld [vmem:[#allocation9 + $0x114] sm:$0xf] }
  0xbd   :  { %1099 = vmatpush.bf16.msrb.mxu1 %v1684_v61  ;;  %1086 = vmatpush.bf16.msrb.mxu0 %v1620_v18  ;;  %v1512_v31 = vor.u32 %v1813_v32, %v1509_v33  ;;  %v1861_v61 = vld [vmem:[#allocation9 + $0x1b4] sm:$0xf]  ;;  %v1688_v18 = vor.u32 %v1857_v14, %v1685_v15  ;;  %v1621_v28 = vld [vmem:[#allocation9 + $0x118] sm:$0xf0] }
  0xbe   :  { %v1624_v33 = vor.u32 %v1841_v27, %v1621_v28 }
  0xc0   :  { %1074 = vmatpush.bf16.msra.mxu3 %v1548_v36  ;;  %1061 = vmatpush.bf16.msra.mxu2 %v1484_v39  ;;  %v1557_v36 = vld [vmem:[#allocation9 + $0x98] sm:$0xf0]  ;;  %v1865_v39 = vld [vmem:[#allocation9 + $0x1d4] sm:$0xf] }
  0xc1   :  { %1100 = vmatpush.bf16.msrb.mxu1 %v1676_v9  ;;  %1087 = vmatpush.bf16.msrb.mxu0 %v1612_v30  ;;  %v1720_v42 = vor.u32 %v1865_v39, %v1717_v41  ;;  %v225_v9 = vperm.slane %v2102_v63, 1  ;;  %v1839_v39 = vld [vmem:[#allocation9 + $0x104] sm:$0xf] }
  0xc4   :  { %1119 = vmatpush.bf16.msrb.mxu3 %v1608_v40  ;;  %1106 = vmatpush.bf16.msrb.mxu2 %v1544_v46  ;;  %v1560_v40 = vor.u32 %v1825_v38, %v1557_v36 }
  0xc5   :  { %1145 = vmatpush.bf16.msra.mxu1 %v1736_v17  ;;  %1132 = vmatpush.bf16.msra.mxu0 %v1672_v37 }
  0xc8   :  { %1120 = vmatpush.bf16.msrb.mxu3 %v1600_v43  ;;  %1107 = vmatpush.bf16.msrb.mxu2 %v1536_v58  ;;  %v1811_v43 = vld [vmem:[#allocation9 + $0x24] sm:$0xf]  ;;  %v1849_v58 = vld [vmem:[#allocation9 + $0x154] sm:$0xf] }
  0xc9   :  { %1146 = vmatpush.bf16.msra.mxu1 %v1728_v29  ;;  %v1504_v46 = vor.u32 %v1811_v43, %v1501_v44  ;;  %1133 = vmatpush.bf16.msra.mxu0 %v1664_v48  ;;  %v1656_v60 = vor.u32 %v1849_v58, %v1653_v59  ;;  %v1680_v29 = vor.u32 %v1855_v22, %v1677_v23  ;;  %v227_v44 = vperm.slane %v2102_v63, 3  ;;  %v1163_v63 = vld [vmem:[%s2124_s7] sm:$0xff] }
  0xca   :  { %1165 = vst.msk [vmem:[#allocation2] sm:$0xff] %vm1164_vm1, %v1163_v63 }
  0xcc   :  { %1121 = vmatpush.bf16.msrb.mxu3 %v1592_v52  ;;  %1108 = vmatpush.bf16.msrb.mxu2 %v1528_v6  ;;  %v1552_v52 = vor.u32 %v1823_v49, %v1549_v50  ;;  %v1648_v6 = vor.u32 %v1847_v3, %v1645_v5 }
  0xcd   :  { %1147 = vmatpush.bf16.msra.mxu1 %v1720_v42  ;;  %1134 = vmatpush.bf16.msra.mxu0 %v1656_v60 }
  0xd0   :  { %1122 = vmatpush.bf16.msrb.mxu3 %v1584_v0  ;;  %1109 = vmatpush.bf16.msrb.mxu2 %v1520_v21  ;;  %v1704_v0 = vor.u32 %v1861_v61, %v1701_v62 }
  0xd1   :  { %1148 = vmatpush.bf16.msra.mxu1 %v1712_v54  ;;  %1135 = vmatpush.bf16.msra.mxu0 %v1648_v6 }
  0xd4   :  { %1123 = vmatpush.bf16.msrb.mxu3 %v1576_v13  ;;  %1110 = vmatpush.bf16.msrb.mxu2 %v1512_v31  ;;  %v1640_v13 = vor.u32 %v1845_v11, %v1637_v12 }
  0xd5   :  { %1149 = vmatpush.bf16.msra.mxu1 %v1704_v0 }
  0xd6   :  { %1136 = vmatpush.bf16.msra.mxu0 %v1640_v13 }
  0xd8   :  { %1124 = vmatpush.bf16.msrb.mxu3 %v1568_v25  ;;  %1111 = vmatpush.bf16.msrb.mxu2 %v1504_v46 }
  0xd9   :  { %1150 = vmatpush.bf16.msra.mxu1 %v1696_v10  ;;  %v728_v10 = vld [vmem:[%s2123_s6] sm:$0x3]  ;;  %s2024_s6 = smov [#allocation11]  }
  0xda   :  { %1137 = vmatpush.bf16.msra.mxu0 %v1632_v24  ;;  %v731_v12 = vperm.slane %v728_v10, 1  ;;  %v730_v23 = vperm.slane %v728_v10, 0  ;;  %s1193_s7 = sshll.u32 %s2024_s6, 4  ;;  %s1194_s7 = int_to_ptr.vmem [resolvable:$true] %s1193_s7 }
  0xdc   :  { %1125 = vmatpush.bf16.msrb.mxu3 %v1560_v40  ;;  %1112 = vmatpush.bf16.msrb.mxu2 %v1496_v57  ;;  %v1613_v40 = vld [vmem:[#allocation9 + $0x108] sm:$0xf0] }
  0xdd   :  { %1151 = vmatpush.bf16.msra.mxu1 %v1688_v18  ;;  %v1616_v41 = vor.u32 %v1839_v39, %v1613_v40 }
  0xde   :  { %1138 = vmatpush.bf16.msra.mxu0 %v1624_v33  ;;  %v1166_v33 = vld [vmem:[#allocation2] sm:$0xff] }
  0xe0   :  { %1126 = vmatpush.bf16.msrb.mxu3 %v1552_v52  ;;  %1113 = vmatpush.bf16.msrb.mxu2 %v1488_v4 }
  0xe1   :  { %1152 = vmatpush.bf16.msra.mxu1 %v1680_v29 }
  0xe2   :  { %1139 = vmatpush.bf16.msra.mxu0 %v1616_v41 }
 0x11f   :  { %v587_v17 = vpop.f32.mrf.mxu0 }
 0x120   :  { %v588_v20 = vadd.f32 %v587_v17, %v225_v9  ;;  %v600_v21 = vpop.f32.mrf.mxu1 }
 0x122   :  { %v601_v25 = vadd.f32 %v600_v21, %v588_v20 }
 0x124   :  { %v657_v30 = vmax.f32 %v601_v25, 0.0 }
 0x125   :  { %v561_v32 = vpop.f32.mrf.mxu2 }
 0x126   :  { %v661_v34 = vpack.c.bf16 %v657_v30, %v657_v30  ;;  %v562_v31 = vadd.f32 %v561_v32, %v224_v26  ;;  %v574_v35 = vpop.f32.mrf.mxu3 }
 0x127   :  { %v589_v37 = vpop.f32.mrf.mxu0 }
 0x128   :  { %v575_v38 = vadd.f32 %v574_v35, %v562_v31  ;;  %v602_v36 = vpop.f32.mrf.mxu1  ;;  %1075 = vmatmul.bf16.vlgmr.msra.gmra.mxu3 %v661_v34 }
 0x129   :  { %v1170_v36 = vmul.f32 -0.5, %v1166_v33 }
 0x12a   :  { %v656_v42 = vmax.f32 %v575_v38, 0.0 }
 0x12b   :  { %v1171_v41 = vmul.f32 %v1170_v36, %v1166_v33 }
 0x12c   :  { %v660_v43 = vpack.c.bf16 %v656_v42, %v656_v42 }
 0x12d   :  { %v563_v45 = vpop.f32.mrf.mxu2 }
 0x12e   :  { %v576_v46 = vpop.f32.mrf.mxu3  ;;  %1062 = vmatmul.bf16.vlgmr.msra.gmra.mxu2 %v660_v43 }
 0x12f   :  { %v639_v47 = vpop.f32.mrf.mxu0 }
 0x130   :  { %v640_v48 = vadd.f32 %v639_v47, %v227_v44  ;;  %v652_v49 = vpop.f32.mrf.mxu1  ;;  %v1183_v47 = vlaneseq }
 0x132   :  { %v653_v50 = vadd.f32 %v652_v49, %v640_v48  ;;  %v1184_v48 = vand.u32 127, %v1183_v47 }
 0x134   :  { %v659_v52 = vmax.f32 %v653_v50, 0.0  ;;  %vm1185_vm2 = vcmp.eq.s32.totalorder %v1184_v48, 4 }
 0x135   :  { %v613_v53 = vpop.f32.mrf.mxu2 }
 0x136   :  { %v663_v54 = vpack.c.bf16 %v659_v52, %v659_v52  ;;  %v614_v55 = vadd.f32 %v613_v53, %v226_v51  ;;  %v626_v56 = vpop.f32.mrf.mxu3 }
 0x137   :  { %v641_v57 = vpop.f32.mrf.mxu0 }
 0x138   :  { %v627_v58 = vadd.f32 %v626_v56, %v614_v55  ;;  %v654_v59 = vpop.f32.mrf.mxu1  ;;  %1101 = vmatmul.bf16.vlgmr.msrb.gmra.mxu1 %v663_v54  ;;  %1127 = vmatmul.bf16.vlgmr.msrb.gmra.mxu3 %v661_v34 }
 0x13a   :  { %v658_v60 = vmax.f32 %v627_v58, 0.0 }
 0x13c   :  { %v662_v61 = vpack.c.bf16 %v658_v60, %v658_v60 }
 0x13d   :  { %v615_v62 = vpop.f32.mrf.mxu2 }
 0x13e   :  { %v628_v0 = vpop.f32.mrf.mxu3  ;;  %1088 = vmatmul.bf16.vlgmr.msrb.gmra.mxu0 %v662_v61  ;;  %1114 = vmatmul.bf16.vlgmr.msrb.gmra.mxu2 %v660_v43 }
 0x148   :  { %1153 = vmatmul.bf16.vlgmr.msra.gmra.mxu1 %v663_v54 }
 0x14e   :  { %1140 = vmatmul.bf16.vlgmr.msra.gmra.mxu0 %v662_v61 }
 0x1ab   :  { %v1076_v2 = vpop.f32.mrf.mxu3 }
 0x1b1   :  { %v1063_v3 = vpop.f32.mrf.mxu2 }
 0x1b2   :  { %v1064_v26 = vadd.f32 %v1063_v3, %v730_v23 }
 0x1b3   :  { %v1078_v4 = vpop.f32.mrf.mxu3 }
 0x1b4   :  { %v1077_v29 = vadd.f32 %v1076_v2, %v1064_v26 }
 0x1b5   :  { %v1102_v5 = vpop.f32.mrf.mxu1 }
 0x1b9   :  { %v1065_v6 = vpop.f32.mrf.mxu2 }
 0x1bb   :  { %v1089_v7 = vpop.f32.mrf.mxu0  ;;  %v1128_v8 = vpop.f32.mrf.mxu3 }
 0x1bc   :  { %v1090_v30 = vadd.f32 %v1089_v7, %v1077_v29 }
 0x1bd   :  { %v1104_v9 = vpop.f32.mrf.mxu1 }
 0x1be   :  { %v1103_v34 = vadd.f32 %v1102_v5, %v1090_v30 }
 0x1c1   :  { %v1115_v11 = vpop.f32.mrf.mxu2 }
 0x1c2   :  { %v1116_v16 = vadd.f32 %v1115_v11, %v731_v12 }
 0x1c3   :  { %v1091_v13 = vpop.f32.mrf.mxu0  ;;  %v1130_v14 = vpop.f32.mrf.mxu3 }
 0x1c4   :  { %v1129_v18 = vadd.f32 %v1128_v8, %v1116_v16 }
 0x1c5   :  { %v1154_v15 = vpop.f32.mrf.mxu1 }
 0x1c9   :  { %v1117_v17 = vpop.f32.mrf.mxu2 }
 0x1cb   :  { %v1141_v19 = vpop.f32.mrf.mxu0 }
 0x1cc   :  { %v1142_v20 = vadd.f32 %v1141_v19, %v1129_v18 }
 0x1cd   :  { %v1156_v21 = vpop.f32.mrf.mxu1 }
 0x1ce   :  { %v1155_v22 = vadd.f32 %v1154_v15, %v1142_v20 }
 0x1d0   :  { %v1158_v24 = vmax.f32 %v1155_v22, -20.0 }
 0x1d2   :  { %v1159_v25 = vmin.f32 %v1158_v24, 2.0 }
 0x1d3   :  { %v1143_v27 = vpop.f32.mrf.mxu0 }
 0x1d4   :  { %v1160_v28 = vmul.f32 1.442695, %v1159_v25  ;;  %v1172_v42 = vsub.f32 %v1171_v41, %v1159_v25 }
 0x1d6   :  { %1881 = vpow2.f32 %v1160_v28  ;;  %v1737_v44 = vadd.f32 -0.9189385, %v1172_v42 }
 0x1dc   :  { %v1882_v32 = vpop.eup %1881 }
 0x1dd   :  { %v1167_v31 = vmul.f32 %v1882_v32, %v1166_v33 }
 0x1df   :  { %v1168_v35 = vadd.f32 %v1167_v31, %v1103_v34 }
 0x1e1   :  { %1883 = vtanh.f32 %v1168_v35 }
 0x1e7   :  { %v1884_v37 = vpop.eup %1883 }
 0x1e8   :  { %v1174_v38 = vmul.f32 %v1884_v37, %v1884_v37 }
 0x1ea   :  { %v1175_v39 = vsub.f32 1.0, %v1174_v38 }
 0x1ec   :  { %v1176_v40 = vadd.f32 1e-07, %v1175_v39 }
 0x1ee   :  { %1885 = vlog2.f32 %v1176_v40 }
 0x1f4   :  { %v1886_v43 = vpop.eup %1885 }
 0x1f5   :  { %v1178_v45 = vmul.f32 0.6931472, %v1886_v43 }
 0x1f7   :  { %v1179_v46 = vsub.f32 %v1737_v44, %v1178_v45 }
 0x1f9   :  { %1180 = vadd.xlane.f32.xlu0 %v1179_v46 }
 0x26c   :  { %v1181_v49 = vpop.xlane.xlu0 %1180 }
 0x26d   :  { %v1738_v50 = vadd.f32 113.948395, %v1181_v49 }
 0x26f   :  { %v1186_v51 = vsel %vm1185_vm2, %v1738_v50, %v1884_v37 }
 0x270   :  { %1187 = vst [vmem:[#allocation11] sm:$0xff] %v1186_v51 }
 0x271   :  { %1198 = dma.vmem_to_hbm [thread:$0]  %s1194_s7, 128, %s1196_s11, [#allocation5]  }
 0x272   :  { %2013 = dma.done.wait [#allocation5], 128  }
 0x273   :  { %2014 = vsyncadd [#allocation5], 4294967168 }
 0x274   :  { %1203 = vsyncpa [#allocation4], 1 }
 0x275   :  { %1204 = vsyncpa [#allocation7], 1 }
 0x276   :  { %1205 = vsyncpa [#allocation10], 1 }
 0x277   :  { %1206 = vsyncpa [#allocation5], 1 }

</bundles_post_ra>
